<compile_context>
chip_gen: v7x
topology: tpu7x:2x2x1
jax: 0.10.0
libtpu: 0.0.40
codegen_flags: <defaults>
</compile_context>

<pallas_src>
import functools

import jax
import jax.numpy as jnp
from jax.experimental import pallas as pl
from jax.experimental.pallas import tpu as pltpu

K = 28 * 28      # 784 (divisible by 8, so a full-K f32 block tiles cleanly)
N = 10           # logical output width
N_PAD = 128      # lane-dense weight slab width (full MXU columns)


def _round_up(x, m):
    return (x + m - 1) // m * m


def _cdiv(a, b):
    return -(-a // b)


def _linear_kernel(x_ref, w_ref, b_ref, o_ref):
    # x_ref: (tm, 784) f32   w_ref: (784, 128) bf16 (cols >= 10 are zero)
    # b_ref: (1, 10)   f32   o_ref: (tm, 10)  f32
    x = x_ref[...].astype(jnp.bfloat16)                 # cheap VPU pack, hidden under DMA
    acc = jnp.dot(x, w_ref[...], preferred_element_type=jnp.float32)
    o_ref[...] = acc[:, :N] + b_ref[...]


def prepare_params(w, b):
    """One-time layout prep: w (10, 784), b (10,) -> (784, 128) bf16, (1, 10) f32."""
    w_t_pad = jnp.zeros((K, N_PAD), jnp.float32).at[:, :N].set(w.T)
    w_t_pad = w_t_pad.astype(jnp.bfloat16)              # (784, 128) bf16, VMEM-resident
    b_row = b.reshape(1, N).astype(jnp.float32)         # (1, 10) f32
    return w_t_pad, b_row


@functools.partial(jax.jit, static_argnames=("tm",))
def net_forward(x, w_t_pad, b_row, *, tm=2048):
    """x: (B, 1, 28, 28) f32 -> (B, 10) f32.  Matches torch: flatten(x, 1) @ W^T + b."""
    B = x.shape[0]
    x_flat = x.reshape(B, K)                             # metadata-only reshape, stays f32

    # Batch tile: at most tm rows, at least a full f32 sublane group (8).
    tm_eff = min(tm, _round_up(B, 8))
    # v7x has 2 TensorCores; make sure the "parallel" grid axis has >= 2 steps
    # when the batch is big enough to split (no effect on single-TC v5e/v6e).
    if B > 16 and _cdiv(B, tm_eff) < 2:
        tm_eff = _round_up(_cdiv(B, 2), 8)
    grid = _cdiv(B, tm_eff)

    cost = pl.CostEstimate(
        flops=2 * B * K * N,
        transcendentals=0,
        bytes_accessed=B * (K * 4 + N * 4) + K * N_PAD * 2 + N * 4,
    )

    out = pl.pallas_call(
        _linear_kernel,
        out_shape=jax.ShapeDtypeStruct((B, N), jnp.float32),
        grid=(grid,),
        in_specs=[
            pl.BlockSpec((tm_eff, K), lambda i: (i, 0)),     # x: tiled over batch, full K
            pl.BlockSpec((K, N_PAD), lambda i: (0, 0)),      # W: VMEM-resident
            pl.BlockSpec((1, N), lambda i: (0, 0)),          # bias: resident
        ],
        out_specs=pl.BlockSpec((tm_eff, N), lambda i: (i, 0)),
        compiler_params=pltpu.CompilerParams(
            dimension_semantics=("parallel",),   # lets v7x split batch tiles across 2 TCs
            vmem_limit_bytes=32 * 1024 * 1024,   # tm=2048: ~13 MiB double-buffered, safe on v7x
        ),
        cost_estimate=cost,
    )(x_flat, w_t_pad, b_row)

    return out


def init_params(key):
    # nn.Linear(784, 10): weight (10, 784), bias (10,), U(-1/sqrt(784), 1/sqrt(784))
    kw, kb = jax.random.split(key)
    bound = 1.0 / jnp.sqrt(784.0)
    w = jax.random.uniform(kw, (10, 784), jnp.float32, -bound, bound)
    b = jax.random.uniform(kb, (10,), jnp.float32, -bound, bound)
    return w, b


if __name__ == "__main__":
    key = jax.random.PRNGKey(0)
    kx, kp = jax.random.split(key)

    B = 8
    x = jax.random.normal(kx, (B, 1, 28, 28), jnp.float32)
    w, b = init_params(kp)

    w_t_pad, b_row = prepare_params(w, b)   # precomputed once, off the hot path

    y = net_forward(x, w_t_pad, b_row)
    jax.block_until_ready(y)
    assert y.shape == (B, 10)

    x_flat = x.reshape(B, -1)

    # Tight check against the kernel's exact math (bf16 inputs, f32 accum).
    y_bf16_ref = (
        x_flat.astype(jnp.bfloat16).astype(jnp.float32)
        @ w.T.astype(jnp.bfloat16).astype(jnp.float32)
    ) + b
    assert jnp.allclose(y, y_bf16_ref, atol=2e-3, rtol=2e-3)

    # Loose check against full-f32 PyTorch semantics (bf16 quantization only).
    y_f32_ref = jnp.matmul(x_flat, w.T, precision=jax.lax.Precision.HIGHEST) + b
    assert jnp.allclose(y, y_f32_ref, atol=5e-2, rtol=5e-2)

    print("KERNEL_OK")
</pallas_src>

<mosaic_0001>
module attributes {stable_mosaic.version = 11 : i64} {
  func.func @_linear_kernel(%arg0: i32, %arg1: memref<8x784xf32, #tpu.memory_space<vmem>>, %arg2: memref<784x128xbf16, #tpu.memory_space<vmem>>, %arg3: memref<1x10xf32, #tpu.memory_space<vmem>>, %arg4: memref<8x10xf32, #tpu.memory_space<vmem>>) attributes {dimension_semantics = [#tpu.dimension_semantics<parallel>], iteration_bounds = array<i64: 1>, scalar_prefetch = 0 : i64, scratch_operands = 0 : i64, tpu.core_type = #tpu.core_type<tc>, window_params = [{transform_indices = @transform_0, window_bounds = array<i64: 8, 784>}, {pipeline_mode = #tpu.pipeline_mode<synchronous>, transform_indices = @transform_1, window_bounds = array<i64: 784, 128>}, {pipeline_mode = #tpu.pipeline_mode<synchronous>, transform_indices = @transform_2, window_bounds = array<i64: 1, 10>}, {transform_indices = @transform_3, window_bounds = array<i64: 8, 10>}]} {
    %c0 = arith.constant 0 : index
    %c0_0 = arith.constant 0 : index
    %0 = vector.load %arg1[%c0, %c0_0] : memref<8x784xf32, #tpu.memory_space<vmem>>, vector<8x784xf32>
    %1 = arith.truncf %0 : vector<8x784xf32> to vector<8x784xbf16>
    %c0_1 = arith.constant 0 : index
    %c0_2 = arith.constant 0 : index
    %2 = vector.load %arg2[%c0_1, %c0_2] : memref<784x128xbf16, #tpu.memory_space<vmem>>, vector<784x128xbf16>
    %cst = arith.constant dense<0.000000e+00> : vector<8x128xf32>
    %3 = tpu.matmul %1, %2, %cst {dimension_numbers = #tpu.dot_dimension_numbers<[1], [0], [0], [1], [0, 0, 1, 1], [], []>} : vector<8x784xbf16>, vector<784x128xbf16>, vector<8x128xf32> -> vector<8x128xf32>
    %4 = vector.extract_strided_slice %3 {offsets = [0, 0], sizes = [8, 10], strides = [1, 1]} : vector<8x128xf32> to vector<8x10xf32>
    %c0_3 = arith.constant 0 : index
    %c0_4 = arith.constant 0 : index
    %5 = vector.load %arg3[%c0_3, %c0_4] : memref<1x10xf32, #tpu.memory_space<vmem>>, vector<1x10xf32>
    %6 = vector.broadcast %5 : vector<1x10xf32> to vector<8x10xf32>
    %7 = arith.addf %4, %6 : vector<8x10xf32>
    %c0_5 = arith.constant 0 : index
    %c0_6 = arith.constant 0 : index
    %8 = vector.load %arg4[%c0_5, %c0_6] : memref<8x10xf32, #tpu.memory_space<vmem>>, vector<8x10xf32>
    tpu.vector_store %arg4[%c0_5, %c0_6], %7 {strides = array<i32>} : memref<8x10xf32, #tpu.memory_space<vmem>>, vector<8x10xf32>,
    return
  }
  func.func @transform_0(%arg0: i32) -> (i32, i32) {
    %c0_i32 = arith.constant 0 : i32
    %c0_i32_0 = arith.constant 0 : i32
    return %arg0, %c0_i32 : i32, i32
  }
  func.func @transform_1(%arg0: i32) -> (i32, i32) {
    %c0_i32 = arith.constant 0 : i32
    %c0_i32_0 = arith.constant 0 : i32
    %c0_i32_1 = arith.constant 0 : i32
    return %c0_i32, %c0_i32_0 : i32, i32
  }
  func.func @transform_2(%arg0: i32) -> (i32, i32) {
    %c0_i32 = arith.constant 0 : i32
    %c0_i32_0 = arith.constant 0 : i32
    %c0_i32_1 = arith.constant 0 : i32
    return %c0_i32, %c0_i32_0 : i32, i32
  }
  func.func @transform_3(%arg0: i32) -> (i32, i32) {
    %c0_i32 = arith.constant 0 : i32
    %c0_i32_0 = arith.constant 0 : i32
    return %arg0, %c0_i32 : i32, i32
  }
}

</mosaic_0001>

<bundles_post_ra>
// kernel: net_forward.1
= control target key start
LH: loop header
LB: loop body
LE: loop exit
PB: predicated region body
PF: predicated region fallthrough
CT: control target
= control target key end

     0   :  { %v811_v41 = vmov 0.0   ;;  %vm812_vm0 = vmmov 0   ;;  %s1017_s0 = inlined_call_operand.vmem [shape: f32[8,784], index: 0, kind: input, shape index: {}]   ;;  %s1018_s1 = inlined_call_operand.vmem [shape: bf16[784,128], index: 1, kind: input, shape index: {}]   ;;  %s1019_s2 = inlined_call_operand.vmem [shape: f32[1,10], index: 2, kind: input, shape index: {}]   ;;  %s1020_s3 = inlined_call_operand.hbm [shape: f32[8,10], index: 3, kind: output, shape index: {}]  }
   0x1   :  { %v738_v0 = vld [vmem:[%s1018_s1 + $0x40] sm:$0xff]   ;;  %v742_v4 = vld [vmem:[%s1018_s1 + $0x48] sm:$0xff]   ;;  %v746_v8 = vld [vmem:[%s1018_s1 + $0x50] sm:$0xff]  }
   0x2   :  { %v739_v1 = vld [vmem:[%s1018_s1 + $0xc0] sm:$0xff]   ;;  %661 = vmatprep.subr.bf16.mxu0 %v738_v0  ;;  %v743_v5 = vld [vmem:[%s1018_s1 + $0xc8] sm:$0xff]   ;;  %v747_v9 = vld [vmem:[%s1018_s1 + $0xd0] sm:$0xff]  }
   0x3   :  { %v740_v2 = vld [vmem:[%s1018_s1] sm:$0xff]   ;;  %683 = vmatprep.subr.bf16.mxu1 %v739_v1  ;;  %v744_v6 = vld [vmem:[%s1018_s1 + $0x8] sm:$0xff]   ;;  %v748_v10 = vld [vmem:[%s1018_s1 + $0x10] sm:$0xff]  }
   0x4   :  { %v741_v3 = vld [vmem:[%s1018_s1 + $0x80] sm:$0xff]   ;;  %662 = vmatpush3.bf16.msra.mxu0 %v740_v2  ;;  %v745_v7 = vld [vmem:[%s1018_s1 + $0x88] sm:$0xff]   ;;  %v749_v11 = vld [vmem:[%s1018_s1 + $0x90] sm:$0xff]  }
   0x5   :  { %684 = vmatpush3.bf16.msra.mxu1 %v741_v3  ;;  %663 = vmatprep.subr.bf16.mxu0 %v742_v4  ;;  %v750_v12 = vld [vmem:[%s1018_s1 + $0x58] sm:$0xff]   ;;  %v754_v16 = vld [vmem:[%s1018_s1 + $0x60] sm:$0xff]   ;;  %v758_v20 = vld [vmem:[%s1018_s1 + $0x68] sm:$0xff]  }
   0x6   :  { %685 = vmatprep.subr.bf16.mxu1 %v743_v5  ;;  %v751_v13 = vld [vmem:[%s1018_s1 + $0xd8] sm:$0xff]   ;;  %v755_v17 = vld [vmem:[%s1018_s1 + $0xe0] sm:$0xff]   ;;  %v759_v21 = vld [vmem:[%s1018_s1 + $0xe8] sm:$0xff]  }
   0x7   :  { %v752_v14 = vld [vmem:[%s1018_s1 + $0x18] sm:$0xff]   ;;  %v756_v18 = vld [vmem:[%s1018_s1 + $0x20] sm:$0xff]   ;;  %v760_v22 = vld [vmem:[%s1018_s1 + $0x28] sm:$0xff]  }
   0x8   :  { %664 = vmatpush3.bf16.msra.mxu0 %v744_v6  ;;  %v753_v15 = vld [vmem:[%s1018_s1 + $0x98] sm:$0xff]   ;;  %v757_v19 = vld [vmem:[%s1018_s1 + $0xa0] sm:$0xff]   ;;  %v761_v23 = vld [vmem:[%s1018_s1 + $0xa8] sm:$0xff]  }
   0x9   :  { %686 = vmatpush3.bf16.msra.mxu1 %v745_v7  ;;  %665 = vmatprep.subr.bf16.mxu0 %v746_v8  ;;  %v762_v24 = vld [vmem:[%s1018_s1 + $0x70] sm:$0xff]   ;;  %v766_v28 = vld [vmem:[%s1018_s1 + $0x78] sm:$0xff]   ;;  %v17_v32 = vld [vmem:[%s1017_s0 + $0x8] sm:$0xff] }
   0xa   :  { %687 = vmatprep.subr.bf16.mxu1 %v747_v9  ;;  %v763_v25 = vld [vmem:[%s1018_s1 + $0xf0] sm:$0xff]   ;;  %v767_v29 = vld [vmem:[%s1018_s1 + $0xf8] sm:$0xff]   ;;  %v16_v34 = vld [vmem:[%s1017_s0] sm:$0xff]  ;;  %v24_v35 = vpack.c.bf16 %v17_v32, %v17_v32 }
   0xb   :  { %v764_v26 = vld [vmem:[%s1018_s1 + $0x30] sm:$0xff]   ;;  %v768_v30 = vld [vmem:[%s1018_s1 + $0x38] sm:$0xff]   ;;  %v23_v37 = vpack.c.bf16 %v16_v34, %v16_v34  ;;  %v770_v40 = vld [vmem:[%s1018_s1 + $0x140] sm:$0xff]  }
   0xc   :  { %666 = vmatpush3.bf16.msra.mxu0 %v748_v10  ;;  %v765_v27 = vld [vmem:[%s1018_s1 + $0xb0] sm:$0xff]   ;;  %v769_v31 = vld [vmem:[%s1018_s1 + $0xb8] sm:$0xff]   ;;  %458 = vmatprep.mubr.bf16.mxu0 %v24_v35  ;;  %v771_v42 = vld [vmem:[%s1018_s1 + $0x100] sm:$0xff]  }
   0xd   :  { %688 = vmatpush3.bf16.msra.mxu1 %v749_v11  ;;  %667 = vmatprep.subr.bf16.mxu0 %v750_v12  ;;  %v19_v33 = vld [vmem:[%s1017_s0 + $0x18] sm:$0xff]  ;;  %v18_v38 = vld [vmem:[%s1017_s0 + $0x10] sm:$0xff]  ;;  %v772_v43 = vld [vmem:[%s1018_s1 + $0x148] sm:$0xff]  }
   0xe   :  { %689 = vmatprep.subr.bf16.mxu1 %v751_v13  ;;  %v26_v36 = vpack.c.bf16 %v19_v33, %v19_v33  ;;  %v25_v39 = vpack.c.bf16 %v18_v38, %v18_v38  ;;  %v773_v44 = vld [vmem:[%s1018_s1 + $0x108] sm:$0xff]   ;;  %v774_v45 = vld [vmem:[%s1018_s1 + $0x150] sm:$0xff]   ;;  %v776_v47 = vld [vmem:[%s1018_s1 + $0x158] sm:$0xff]  }
   0xf   :  { %v775_v46 = vld [vmem:[%s1018_s1 + $0x110] sm:$0xff]   ;;  %v777_v48 = vld [vmem:[%s1018_s1 + $0x118] sm:$0xff]   ;;  %v778_v49 = vld [vmem:[%s1018_s1 + $0x160] sm:$0xff]  }
  0x10   :  { %668 = vmatpush3.bf16.msra.mxu0 %v752_v14  ;;  %498 = vmatprep.mubr.bf16.mxu1 %v26_v36  ;;  %v779_v50 = vld [vmem:[%s1018_s1 + $0x120] sm:$0xff]   ;;  %v21_v52 = vld [vmem:[%s1017_s0 + $0x28] sm:$0xff]  ;;  %v22_v55 = vld [vmem:[%s1017_s0 + $0x30] sm:$0xff] }
  0x11   :  { %690 = vmatpush3.bf16.msra.mxu1 %v753_v15  ;;  %669 = vmatprep.subr.bf16.mxu0 %v754_v16  ;;  %v786_v51 = vld [vmem:[%s1018_s1 + $0x180] sm:$0xff]   ;;  %v780_v53 = vld [vmem:[%s1018_s1 + $0x168] sm:$0xff]   ;;  %v28_v54 = vpack.c.bf16 %v21_v52, %v21_v52 }
  0x12   :  { %691 = vmatprep.subr.bf16.mxu1 %v755_v17 }
  0x14   :  { %670 = vmatpush3.bf16.msra.mxu0 %v756_v18 }
  0x15   :  { %692 = vmatpush3.bf16.msra.mxu1 %v757_v19  ;;  %671 = vmatprep.subr.bf16.mxu0 %v758_v20 }
  0x16   :  { %693 = vmatprep.subr.bf16.mxu1 %v759_v21 }
  0x18   :  { %672 = vmatpush3.bf16.msra.mxu0 %v760_v22 }
  0x19   :  { %694 = vmatpush3.bf16.msra.mxu1 %v761_v23  ;;  %673 = vmatprep.subr.bf16.mxu0 %v762_v24 }
  0x1a   :  { %695 = vmatprep.subr.bf16.mxu1 %v763_v25 }
  0x1c   :  { %674 = vmatpush3.bf16.msra.mxu0 %v764_v26 }
  0x1d   :  { %696 = vmatpush3.bf16.msra.mxu1 %v765_v27  ;;  %675 = vmatprep.subr.bf16.mxu0 %v766_v28 }
  0x1e   :  { %697 = vmatprep.subr.bf16.mxu1 %v767_v29 }
  0x20   :  { %676 = vmatpush3.bf16.msra.mxu0 %v768_v30 }
  0x21   :  { %698 = vmatpush3.bf16.msra.mxu1 %v769_v31  ;;  %705 = vmatprep.subr.bf16.mxu0 %v770_v40 }
  0x22   :  { %729 = vmatprep.subr.bf16.mxu1 %v811_v41 }
  0x23   :  { %459 = vmatmul.mubr.bf16.vlgmr.msra.gmra.mrb[0].mxu0 %v23_v37 }
  0x24   :  { %499 = vmatmul.mubr.bf16.vlgmr.msra.gmra.mrb[0].mxu1 %v25_v39  ;;  %706 = vmatpush3.bf16.msra.mxu0 %v771_v42 }
  0x25   :  { %731 = vmatprep.mubr.msk.bf16.mxu1 %vm812_vm0, %v811_v41  ;;  %707 = vmatprep.subr.bf16.mxu0 %v772_v43 }
  0x28   :  { %708 = vmatpush3.bf16.msra.mxu0 %v773_v44 }
  0x29   :  { %709 = vmatprep.subr.bf16.mxu0 %v774_v45 }
  0x2c   :  { %710 = vmatpush3.bf16.msra.mxu0 %v775_v46 }
  0x2d   :  { %711 = vmatprep.subr.bf16.mxu0 %v776_v47 }
  0x30   :  { %712 = vmatpush3.bf16.msra.mxu0 %v777_v48 }
  0x31   :  { %713 = vmatprep.subr.bf16.mxu0 %v778_v49 }
  0x32   :  { %8 = vsyncpa [#allocation3], 0  ;;  %730 = vmatpush3.bf16.msra.mxu1 %v786_v51  ;;  %v29_v56 = vpack.c.bf16 %v22_v55, %v22_v55  ;;  %vm422_vm1 = vcmask 130048   ;;  %538 = vmatprep.mubr.bf16.mxu0 %v28_v54  ;;  %v781_v57 = vld [vmem:[%s1018_s1 + $0x128] sm:$0xff]   ;;  %v782_v58 = vld [vmem:[%s1018_s1 + $0x170] sm:$0xff]   ;;  %s813_s16 = smov [#allocation2]  }
  0x33   :  { %v783_v59 = vld [vmem:[%s1018_s1 + $0x130] sm:$0xff]   ;;  %v784_v60 = vld [vmem:[%s1018_s1 + $0x178] sm:$0xff]   ;;  %v20_v62 = vld [vmem:[%s1017_s0 + $0x20] sm:$0xff]  ;;  %s602_s17 = sshll.u32 %s813_s16, 4  ;;  %vm594_vm2 = vcmask 80896   ;;  %s603_s17 = int_to_ptr.vmem [resolvable:$true] %s602_s17 }
  0x34   :  { %714 = vmatpush3.bf16.msra.mxu0 %v779_v50  ;;  %v785_v61 = vld [vmem:[%s1018_s1 + $0x138] sm:$0xff]   ;;  %v27_v63 = vpack.c.bf16 %v20_v62, %v20_v62  ;;  %v660_v21 = vld [vmem:[%s1019_s2] ss:$0 sm:$0xff]  ;;  %s787_s18 = scalar_lea.vmem %s603_s17, 128  ;;  %p792_p1 = scmp.lt.s32.totalorder %s603_s17, %s603_s17 }
  0x35   :  { %715 = vmatprep.subr.bf16.mxu0 %v780_v53  ;;  %732 = vmatmul.mubr.msk.bf16.vlgmr.msra.gmra.mrb[4].mxu1 %vm422_vm1, %v29_v56  ;;  %p788_p0 = scmp.ne.s32.totalorder %s603_s17, %s787_s18  ;;  %p793_p2 = scmp.lt.s32.totalorder %s787_s18, %s787_s18 }
  0x37   :  { %p794_p3 = por %p793_p2, %p792_p1 }
  0x38   :  { %716 = vmatpush3.bf16.msra.mxu0 %v781_v57 }
  0x39   :  { %717 = vmatprep.subr.bf16.mxu0 %v782_v58  ;;  %p795_p4 = pnand %p794_p3, %p788_p0 }
  0x3c   :  { %718 = vmatpush3.bf16.msra.mxu0 %v783_v59 }
  0x3d   :  { %719 = vmatprep.subr.bf16.mxu0 %v784_v60 }
  0x40   :  { %720 = vmatpush3.bf16.msra.mxu0 %v785_v61 }
  0x43   :  { %539 = vmatmul.mubr.bf16.vlgmr.msra.gmra.mrb[4].mxu0 %v27_v63 }
  0xf6   :  { %v677_v0 = vpop.f32.mrb[0].mxu0 }
  0xf7   :  { %v699_v1 = vpop.f32.mrb[0].mxu1  ;;  %v678_v2 = vpop.f32.mrb[1].mxu0 }
  0xf8   :  { %v700_v3 = vpop.f32.mrb[1].mxu1  ;;  %v679_v4 = vadd.f32 %v678_v2, %v677_v0  ;;  %v680_v6 = vpop.f32.mrb[2].mxu0 }
  0xf9   :  { %v701_v5 = vadd.f32 %v700_v3, %v699_v1  ;;  %v702_v7 = vpop.f32.mrb[2].mxu1  ;;  %v681_v8 = vpop.f32.mrb[3].mxu0 }
  0xfa   :  { %v703_v9 = vpop.f32.mrb[3].mxu1 }
  0xfb   :  { %v501_v10 = vadd.f32 %v701_v5, %v679_v4 }
 0x108   :  { %v580_v11 = vpop.f32.mrb[4].mxu1 }
 0x109   :  { %v733_v12 = vpop.f32.mrb[5].mxu1 }
 0x10a   :  { %v583_v13 = vpop.f32.mrb[6].mxu1 }
 0x10b   :  { %v734_v14 = vpop.f32.mrb[7].mxu1 }
 0x116   :  { %v721_v15 = vpop.f32.mrb[4].mxu0 }
 0x117   :  { %v722_v16 = vpop.f32.mrb[5].mxu0 }
 0x118   :  { %v723_v17 = vadd.f32 %v722_v16, %v721_v15  ;;  %v724_v18 = vpop.f32.mrb[6].mxu0 }
 0x119   :  { %v725_v19 = vpop.f32.mrb[7].mxu0 }
 0x11a   :  { %v541_v20 = vadd.f32 %v723_v17, %v501_v10 }
 0x11c   :  { %v581_v22 = vadd.f32 %v580_v11, %v541_v20 }
 0x11e   :  { %v593_v23 = vadd.f32 %v660_v21, %v581_v22 }
 0x120   :  { %595 = vst.msk [vmem:[#allocation2] sm:$0xff] %vm594_vm2, %v593_v23 }
 0x121   :  { %798 = shalt.err (!%p795_p4)
}
 0x122   :  { %s799_s21 = scalar_lea.hbm %s1020_s3, 128 }
 0x123   :  { %p800_p5 = scmp.ne.s32.totalorder %s1020_s3, %s799_s21  ;;  %p803_p6 = scmp.lt.u32.totalorder %s799_s21, %s1020_s3 }
 0x125   :  { %p805_p7 = pnand %p803_p6, %p800_p5 }
 0x127   :  { %808 = shalt.err (!%p805_p7)
}
 0x128   :  { %605 = dma.vmem_to_hbm [thread:$0]  %s603_s17, 128, %s1020_s3, [#allocation3]  }
 0x129   :  { %809 = dma.done.wait [#allocation3], 128  }
 0x12a   :  { %810 = vsyncadd [#allocation3], 4294967168 }
 0x12b   :  { %609 = vsyncpa [#allocation3], 1 }

</bundles_post_ra>
